<compile_context>
chip_gen: v7x
topology: tpu7x:2x2x1
jax: 0.10.0
libtpu: 0.0.40
codegen_flags: <defaults>
</compile_context>

<pallas_src>
import functools

import jax
import jax.numpy as jnp
from jax import lax
from jax.experimental import pallas as pl
from jax.experimental.pallas import tpu as pltpu


def _fused_kernel(params_ref, x_ref, o_ref, *, count, inv_n, eps):
    # params (SMEM f32[4]): [gamma, beta, conv_w, conv_b].  Scalar-ALU slots are
    # idle, so all parameter folding happens here (model is a single dispatch).
    gamma = params_ref[0]
    beta = params_ref[1]
    w = params_ref[2]
    b = params_ref[3]
    gw = gamma * w
    cc = beta * w + b
    a_coef = count * gw * gw          # L * (gamma*w)^2
    b_coef = count * cc * cc          # L * (beta*w + b)^2

    # Full-array VMEM block: only the 112 logical lanes participate in the
    # reduce (padding masked), so inv_n stays exactly 1/L.
    r = jnp.maximum(x_ref[0], 0.0)                      # ReLU, (1, L)
    vals = jnp.concatenate([r, r * r], axis=0)          # (2, L): r / r^2 per sublane
    s = jnp.sum(vals, axis=-1, keepdims=True)           # ONE cross-lane reduce -> (2, 1)
    mean = s[0:1, :] * inv_n                            # (1, 1)
    var = s[1:2, :] * inv_n - mean * mean               # biased batch var (BN train mode)
    # v2 = sum(v1^2) = A*var/(var+eps) + B ; cross term vanishes (sum(r-mean)=0)
    ratio = var * pl.reciprocal(var + eps, approx=True)  # EUP approx rcp (free slot)
    v2 = a_coef * ratio + b_coef                         # (1, 1)
    o_ref[0] = jnp.maximum(v2[0, 0], 0.0)                # final ReLU, scalar SMEM store


@functools.partial(jax.jit, static_argnames=("eps",))
def model_forward(x, params, eps=1e-5):
    """x: (1, 1, L) float32 (interpreted as N=1, C=1, spatial=L);
    params: f32[4] = [gamma, beta, conv_w, conv_b]."""
    n, c, L = x.shape
    assert n == 1 and c == 1, "module is single-channel; conv1d step assumes N=C=1"

    kernel = functools.partial(
        _fused_kernel, count=float(L), inv_n=1.0 / float(L), eps=float(eps)
    )
    out = pl.pallas_call(
        kernel,
        out_shape=jax.ShapeDtypeStruct((1,), jnp.float32),
        in_specs=[
            pl.BlockSpec(memory_space=pltpu.MemorySpace.SMEM),   # raw scalar params
            pl.BlockSpec(memory_space=pltpu.MemorySpace.VMEM),   # full-array input block
        ],
        out_specs=pl.BlockSpec(memory_space=pltpu.MemorySpace.SMEM),  # scalar result
        cost_estimate=pl.CostEstimate(flops=600, transcendentals=1, bytes_accessed=512),
    )(params, x.astype(jnp.float32))
    # conv1d output shape (N, C_out, L_out) = (1, 1, 1)
    return out.reshape(1, 1, 1)


def _reference(x, params, eps=1e-5):
    gamma, beta, w, b = params[0], params[1], params[2], params[3]
    r = jnp.maximum(x, 0.0)
    mean = jnp.mean(r)
    var = jnp.mean((r - mean) ** 2)
    y = (r - mean) * lax.rsqrt(var + eps) * gamma + beta
    v1 = y * w + b
    v2 = jnp.sum(v1 * v1)
    return jnp.maximum(v2, 0.0).reshape(1, 1, 1)


if __name__ == "__main__":
    key = jax.random.PRNGKey(0)
    k1, k2 = jax.random.split(key)

    # x1 = torch.randn(1, 1, 112), interpreted as (N=1, C=1, spatial=112)
    x = jax.random.normal(k1, (1, 1, 112), dtype=jnp.float32)

    # Conv2d(1,1,1x1) deterministic init (fan_in=1 -> U(-1,1)); BatchNorm2d
    # affine defaults gamma=1, beta=0.  params = [gamma, beta, conv_w, conv_b]
    wb = jax.random.uniform(k2, (2,), minval=-1.0, maxval=1.0, dtype=jnp.float32)
    params = jnp.concatenate([jnp.array([1.0, 0.0], dtype=jnp.float32), wb])

    out = model_forward(x, params)
    jax.block_until_ready(out)

    ref = _reference(x, params)
    assert out.shape == (1, 1, 1)
    assert jnp.allclose(out, ref, rtol=1e-3, atol=1e-3), (out, ref)
    print("KERNEL_OK")
</pallas_src>

<mosaic_0001>
module attributes {stable_mosaic.version = 11 : i64} {
  func.func @_fused_kernel(%arg0: memref<4xf32, #tpu.memory_space<smem>>, %arg1: memref<1x1x112xf32, #tpu.memory_space<vmem>>, %arg2: memref<1xf32, #tpu.memory_space<smem>>) attributes {dimension_semantics = [], scalar_prefetch = 0 : i64, scratch_operands = 0 : i64, tpu.core_type = #tpu.core_type<tc>} {
    %c0 = arith.constant 0 : index
    %0 = memref.load %arg0[%c0] : memref<4xf32, #tpu.memory_space<smem>>
    %c1 = arith.constant 1 : index
    %1 = memref.load %arg0[%c1] : memref<4xf32, #tpu.memory_space<smem>>
    %c2 = arith.constant 2 : index
    %2 = memref.load %arg0[%c2] : memref<4xf32, #tpu.memory_space<smem>>
    %c3 = arith.constant 3 : index
    %3 = memref.load %arg0[%c3] : memref<4xf32, #tpu.memory_space<smem>>
    %4 = arith.mulf %0, %2 : f32
    %5 = arith.mulf %1, %2 : f32
    %6 = arith.addf %5, %3 : f32
    %cst = arith.constant 1.120000e+02 : f32
    %7 = arith.mulf %cst, %4 : f32
    %8 = arith.mulf %7, %4 : f32
    %cst_0 = arith.constant 1.120000e+02 : f32
    %9 = arith.mulf %cst_0, %6 : f32
    %10 = arith.mulf %9, %6 : f32
    %c0_1 = arith.constant 0 : index
    %c0_2 = arith.constant 0 : index
    %c0_3 = arith.constant 0 : index
    %11 = vector.load %arg1[%c0_1, %c0_2, %c0_3] : memref<1x1x112xf32, #tpu.memory_space<vmem>>, vector<1x1x112xf32>
    %12 = vector.shape_cast %11 : vector<1x1x112xf32> to vector<1x112xf32>
    %cst_4 = arith.constant 0.000000e+00 : f32
    %13 = vector.broadcast %cst_4 : f32 to vector<1x112xf32>
    %14 = arith.maximumf %12, %13 : vector<1x112xf32>
    %15 = arith.mulf %14, %14 : vector<1x112xf32>
    %16 = tpu.concatenate %14, %15 in 0 : vector<1x112xf32>, vector<1x112xf32> -> vector<2x112xf32>
    %cst_5 = arith.constant dense<0.000000e+00> : vector<2xf32>
    %17 = vector.multi_reduction <add>, %16, %cst_5 [1] : vector<2x112xf32> to vector<2xf32>
    %18 = vector.shape_cast %17 : vector<2xf32> to vector<2x1xf32>
    %19 = vector.extract_strided_slice %18 {offsets = [0, 0], sizes = [1, 1], strides = [1, 1]} : vector<2x1xf32> to vector<1x1xf32>
    %cst_6 = arith.constant 0.00892857183 : f32
    %20 = vector.broadcast %cst_6 : f32 to vector<1x1xf32>
    %21 = arith.mulf %19, %20 : vector<1x1xf32>
    %22 = vector.extract_strided_slice %18 {offsets = [1, 0], sizes = [1, 1], strides = [1, 1]} : vector<2x1xf32> to vector<1x1xf32>
    %cst_7 = arith.constant 0.00892857183 : f32
    %23 = vector.broadcast %cst_7 : f32 to vector<1x1xf32>
    %24 = arith.mulf %22, %23 : vector<1x1xf32>
    %25 = arith.mulf %21, %21 : vector<1x1xf32>
    %26 = arith.subf %24, %25 : vector<1x1xf32>
    %cst_8 = arith.constant 9.99999974E-6 : f32
    %27 = vector.broadcast %cst_8 : f32 to vector<1x1xf32>
    %28 = arith.addf %26, %27 : vector<1x1xf32>
    %29 = tpu.reciprocal %28 {approx = true} : vector<1x1xf32> -> vector<1x1xf32>
    %30 = arith.mulf %26, %29 : vector<1x1xf32>
    %31 = vector.broadcast %8 : f32 to vector<1x1xf32>
    %32 = arith.mulf %31, %30 : vector<1x1xf32>
    %33 = vector.broadcast %10 : f32 to vector<1x1xf32>
    %34 = arith.addf %32, %33 : vector<1x1xf32>
    %35 = vector.extract %34[0, 0] : f32 from vector<1x1xf32>
    %cst_9 = arith.constant 0.000000e+00 : f32
    %36 = arith.maximumf %35, %cst_9 : f32
    %c0_10 = arith.constant 0 : index
    %37 = memref.load %arg2[%c0_10] : memref<1xf32, #tpu.memory_space<smem>>
    memref.store %36, %arg2[%c0_10] : memref<1xf32, #tpu.memory_space<smem>>
    return
  }
}

</mosaic_0001>

<bundles_post_ra>
// kernel: model_forward.1
= control target key start
LH: loop header
LB: loop body
LE: loop exit
PB: predicated region body
PF: predicated region fallthrough
CT: control target
= control target key end

     0   :  { %7 = vsyncpa [#allocation5], 0  ;;  %s205_s0 = inlined_call_operand.vmem [shape: f32[4], index: 0, kind: input, shape index: {}]   ;;  %s206_s1 = inlined_call_operand.hbm [shape: f32[1,1,112], index: 1, kind: input, shape index: {}]   ;;  %s207_s2 = inlined_call_operand.hbm [shape: f32[1], index: 2, kind: output, shape index: {}]  }
   0x1   :  { %8 = vsyncpa [#allocation3], 0 }
   0x2   :  { %9 = vsyncpa [#allocation4], 0  ;;  %s16_s11 = sshll.u32 %s205_s0, 4  ;;  %s17_s11 = int_to_ptr.vmem [resolvable:$true] %s16_s11 }
   0x3   :  { %s109_s12 = scalar_lea.vmem %s17_s11, 16  ;;  %p114_p1 = scmp.lt.s32.totalorder %s17_s11, %s17_s11 }
   0x4   :  { %p110_p0 = scmp.ne.s32.totalorder %s17_s11, %s109_s12  ;;  %p115_p2 = scmp.lt.s32.totalorder %s109_s12, %s109_s12 }
   0x6   :  { %p116_p3 = por %p115_p2, %p114_p1 }
   0x8   :  { %p117_p4 = pnand %p116_p3, %p110_p0 }
   0xa   :  { %120 = shalt.err (!%p117_p4)
}
   0xb   :  { %s159_s13 = smov [#allocation2]   ;;  %s160_s14 = smov [#allocation6]  }
   0xc   :  { %19 = dma.vmem_to_smem %s17_s11, 16, %s159_s13, [#allocation5]  }
   0xd   :  { %s26_s15 = sshll.u32 %s160_s14, 4  ;;  %s121_s18 = scalar_lea.hbm %s206_s1, 16  ;;  %s27_s15 = int_to_ptr.vmem [resolvable:$true] %s26_s15 }
   0xe   :  { %p122_p5 = scmp.ne.s32.totalorder %s206_s1, %s121_s18  ;;  %p125_p6 = scmp.lt.u32.totalorder %s121_s18, %s206_s1 }
  0x10   :  { %p127_p7 = pnand %p125_p6, %p122_p5 }
  0x12   :  { %130 = shalt.err (!%p127_p7)
}
  0x13   :  { %s131_s22 = scalar_lea.vmem %s27_s15, 16  ;;  %s135_s23 = scalar_lea.vmem %s27_s15, 32 }
  0x14   :  { %p132_p8 = scmp.ne.s32.totalorder %s27_s15, %s131_s22  ;;  %p136_p9 = scmp.lt.s32.totalorder %s27_s15, %s27_s15 }
  0x15   :  { %p137_p10 = scmp.lt.s32.totalorder %s135_s23, %s131_s22 }
  0x17   :  { %p138_p11 = por %p137_p10, %p136_p9 }
  0x19   :  { %p139_p12 = pnand %p138_p11, %p132_p8 }
  0x1b   :  { %142 = shalt.err (!%p139_p12)
}
  0x1c   :  { %29 = dma.hbm_to_vmem [thread:$0]  %s206_s1, 16, %s27_s15, [#allocation3]  }
  0x1d   :  { %153 = dma.done.wait [#allocation5], 16  }
  0x1e   :  { %154 = vsyncadd [#allocation5], 4294967280 }
  0x1f   :  { %155 = dma.done.wait [#allocation3], 16  }
  0x20   :  { %156 = vsyncadd [#allocation3], 4294967280 }
  0x21   :  { %36 = sfence }
  0x22   :  { %v48_v0 = vld [vmem:[#allocation6] sm:$0x1]  ;;  %v52_v1 = vlaneseq  ;;  %vm57_vm0 = vcmask 1040384   ;;  %vm59_vm1 = vcmask 910336   ;;  %s98_s26 = sld [smem:[#allocation2 + $0x1]]  ;;  %s99_s27 = sld [smem:[#allocation2 + $0x2]] }
  0x23   :  { %v49_v2 = vmax.f32 %v48_v0, 0.0  ;;  %s37_s1 = sld [smem:[#allocation2]]  ;;  %s100_s28 = sld [smem:[#allocation2 + $0x3]] }
  0x24   :  { %v53_v3 = vshrl.u32 %v52_v1, 7  ;;  %s161_s9 = smov 0.0   ;;  %s143_s13 = scalar_lea.hbm %s207_s2, 16 }
  0x25   :  { %v50_v4 = vmul.f32 %v49_v2, %v49_v2  ;;  %p144_p13 = scmp.ne.s32.totalorder %s207_s2, %s143_s13  ;;  %p147_p0 = scmp.lt.u32.totalorder %s143_s13, %s207_s2 }
  0x26   :  { %v54_v5 = vsub.s32 0, %v53_v3 }
  0x27   :  { %p149_p1 = pnand %p147_p0, %p144_p13 }
  0x28   :  { %v55_v6 = vrot.slane %v50_v4, %v54_v5  ;;  %s42_s29 = smul.f32 %s99_s27, %s98_s26 }
  0x29   :  { %s41_s30 = smul.f32 %s99_s27, %s37_s1 }
  0x2a   :  { %v58_v7 = vsel %vm57_vm0, %v49_v2, %v55_v6  ;;  %s43_s3 = sadd.f32 %s100_s28, %s42_s29 }
  0x2b   :  { %v60_v8 = vsel %vm59_vm1, %v58_v7, 0.0  ;;  %s44_s4 = smul.f32 112.0, %s41_s30 }
  0x2c   :  { %61 = vadd.xlane.f32.xlu0 %v60_v8  ;;  %s46_s5 = smul.f32 112.0, %s43_s3 }
  0x2d   :  { %s45_s6 = smul.f32 %s44_s4, %s41_s30 }
  0x2e   :  { %s47_s7 = smul.f32 %s46_s5, %s43_s3 }
  0x2f   :  { %v72_v16 = vstv %s45_s6 }
  0x30   :  { %v74_v18 = vstv %s47_s7 }
  0xb9   :  { %v62_v9 = vpop.xlane.xlu0 %61 }
  0xba   :  { %v63_v10 = vmul.f32 0.008928572, %v62_v9 }
  0xbc   :  { %v64_v11 = vmul.f32 %v63_v10, %v63_v10 }
  0xbe   :  { %v66_v12 = vrot.slane %v64_v11, 7 }
  0xc0   :  { %v68_v13 = vsub.f32 %v63_v10, %v66_v12 }
  0xc2   :  { %v69_v14 = vadd.f32 1e-05, %v68_v13 }
  0xc4   :  { %107 = vrcp.f32 %v69_v14 }
  0xce   :  { %v108_v15 = vpop.eup %107 }
  0xcf   :  { %v71_v17 = vmul.f32 %v108_v15, %v68_v13 }
  0xd1   :  { %v73_v19 = vmul.f32 %v72_v16, %v71_v17 }
  0xd3   :  { %v75_v20 = vadd.f32 %v74_v18, %v73_v19 }
  0xd5   :  { %v77_v21 = vrot.slane %v75_v20, 1 }
  0xd7   :  { %101 = vpush %v77_v21 }
 0x108   :  { %s102_s8 = spop %101 }
 0x109   :  { %s80_s10 = smax.f32 %s161_s9, %s102_s8 }
 0x10a   :  { %82 = sst [smem:[#allocation7]] %s80_s10 }
 0x10b   :  { %152 = shalt.err (!%p149_p1)
}
 0x10c   :  { %s162_s18 = smov [#allocation7]  }
 0x10d   :  { %90 = dma.smem_to_hbm %s162_s18, 16, %s207_s2, [#allocation4]  }
 0x10e   :  { %157 = dma.done.wait [#allocation4], 16  }
 0x10f   :  { %158 = vsyncadd [#allocation4], 4294967280 }
 0x110   :  { %94 = sfence }
 0x111   :  { %95 = vsyncpa [#allocation3], 1 }
 0x112   :  { %96 = vsyncpa [#allocation4], 1 }
 0x113   :  { %97 = vsyncpa [#allocation5], 1 }

</bundles_post_ra>
